<compile_context>
chip_gen: v7x
topology: tpu7x:2x2x1
jax: 0.10.0
libtpu: 0.0.40
codegen_flags: <defaults>
</compile_context>

<pallas_src>
import jax
import jax.numpy as jnp
from jax.experimental import pallas as pl
from jax.experimental.pallas import tpu as pltpu


def _round_up(x, m):
    return (x + m - 1) // m * m


# ----------------------------------------------------------------------------
# One-shot operator build (plain XLA; static per model -> build once & reuse).
#   Mt = M.T = Vinv.T @ diag(w**gamma) @ V.T
# ----------------------------------------------------------------------------
def build_fractional_matrix_t(gamma, w, V, Vinv):
    w = jnp.asarray(w, dtype=jnp.float32)
    V = jnp.asarray(V, dtype=jnp.float32)
    Vinv = jnp.asarray(Vinv, dtype=jnp.float32)
    gamma = jnp.asarray(gamma, dtype=jnp.float32)
    wg = jnp.power(w, gamma)                      # assumes w > 0
    return (Vinv.T * wg[None, :]) @ V.T           # (n, n) == M.T, f32


# ----------------------------------------------------------------------------
# Pallas kernel: streamed batched apply  o_tile = x_tile @ Mt
#   Mt is VMEM-resident (constant index_map); accumulation is f32.
# ----------------------------------------------------------------------------
def _apply_kernel(mt_ref, x_ref, o_ref):
    o_ref[...] = jnp.dot(x_ref[...], mt_ref[...],
                         preferred_element_type=jnp.float32).astype(o_ref.dtype)


def fractional_apply(gdvn, mt, *, tile_rows=4096, vmem_budget_bytes=12 << 20):
    """Apply the (pre-built, transposed) fractional operator along the last
    axis of `gdvn`  (== torch.einsum('ik,...k->...i', matrix(), gdvn))."""
    n = mt.shape[0]
    assert mt.shape == (n, n)
    assert gdvn.shape[-1] == n
    orig_shape = gdvn.shape

    # Stream in the producer's dtype (bf16 or f32); no extra HBM cast pass.
    x_dtype = gdvn.dtype
    if x_dtype not in (jnp.bfloat16, jnp.float32):
        gdvn = gdvn.astype(jnp.float32)
        x_dtype = jnp.float32
    mt = mt.astype(x_dtype)                       # tiny one-time cast (n x n)

    x = gdvn.reshape(-1, n)
    b = x.shape[0]
    itemsize = jnp.dtype(x_dtype).itemsize

    # Rows per tile: multiple of 8 sublanes; cap so double-buffered x + o tiles
    # stay inside the scoped-VMEM budget on every generation (v5e default 16MiB).
    max_tb = max(8, (vmem_budget_bytes // (4 * n * itemsize)) // 8 * 8)
    tb = max(8, min(_round_up(min(tile_rows, b), 8), max_tb))
    grid = (pl.cdiv(b, tb),)                      # partial last block handled by Pallas

    out = pl.pallas_call(
        _apply_kernel,
        out_shape=jax.ShapeDtypeStruct((b, n), x_dtype),
        grid=grid,
        in_specs=[
            pl.BlockSpec((n, n), lambda i: (0, 0)),    # Mt: VMEM-resident (never re-fetched)
            pl.BlockSpec((tb, n), lambda i: (i, 0)),   # x: streamed, double-buffered
        ],
        out_specs=pl.BlockSpec((tb, n), lambda i: (i, 0)),
        compiler_params=pltpu.CompilerParams(
            dimension_semantics=("parallel",)),        # megacore sharding on v7x
        cost_estimate=pl.CostEstimate(
            flops=2 * b * n * n,
            transcendentals=0,
            bytes_accessed=itemsize * (2 * b * n + n * n)),
    )(mt, x)

    return out.reshape(orig_shape)


def fractional_forward(gdvn, gamma, w, V, Vinv, *, tile_rows=4096):
    """Convenience wrapper: build operator (f32) + apply.  For repeated calls
    with static gamma/w/V, build Mt once with build_fractional_matrix_t and
    call fractional_apply directly."""
    mt = build_fractional_matrix_t(gamma, w, V, Vinv)
    return fractional_apply(gdvn, mt, tile_rows=tile_rows)


if __name__ == "__main__":
    key = jax.random.PRNGKey(0)
    n_dofs = 128

    k1, k2, k3, k4 = jax.random.split(key, 4)

    # Deterministic synthetic operator parameters (cf. _EigenvalueBase.setup):
    #   w    : positive eigenvalues (w**gamma well-defined)
    #   V    : orthogonal eigenvector matrix (like init.orthogonal_)
    #   Vinv : V.T  (default in setup / reset_operator)
    #   gamma: fractional order (cf. Fractional.initialize)
    w = jnp.linspace(0.5, 2.0, n_dofs, dtype=jnp.float32)
    A = jax.random.normal(k1, (n_dofs, n_dofs), dtype=jnp.float32)
    V, _ = jnp.linalg.qr(A)
    Vinv = V.T
    gamma = 0.5

    # Pure-JAX reference operator
    M_ref = V @ jnp.diag(jnp.power(w, gamma)) @ Vinv

    # Operator is static per model -> build Mt once and reuse across calls.
    mt_f32 = build_fractional_matrix_t(gamma, w, V, Vinv)

    cases = (
        ((2, 4), jnp.float32, 1e-4, k2),   # 8 batch rows, f32 streaming
        ((5,),   jnp.float32, 1e-4, k3),   # 5 rows -> partial block (no pad/slice)
        ((2, 4), jnp.bfloat16, 6e-2, k4),  # bf16 streaming, f32 accumulation
    )
    ok = True
    for batch_shape, dtype, tol, kk in cases:
        gdvn = jax.random.normal(kk, batch_shape + (n_dofs,),
                                 dtype=jnp.float32).astype(dtype)

        out = fractional_apply(gdvn, mt_f32)
        out = jax.block_until_ready(out)

        ref = jnp.einsum("ik,...k->...i", M_ref, gdvn.astype(jnp.float32))

        assert out.shape == gdvn.shape
        assert out.dtype == dtype
        good = bool(jnp.allclose(out.astype(jnp.float32), ref, atol=tol, rtol=tol))
        ok &= good
        assert ok, (batch_shape, str(dtype),
                    float(jnp.max(jnp.abs(out.astype(jnp.float32) - ref))))

    print("KERNEL_OK")
</pallas_src>

<mosaic_0001>
module attributes {stable_mosaic.version = 11 : i64} {
  func.func @_apply_kernel(%arg0: i32, %arg1: memref<128x128xf32, #tpu.memory_space<vmem>>, %arg2: memref<8x128xf32, #tpu.memory_space<vmem>>, %arg3: memref<8x128xf32, #tpu.memory_space<vmem>>) attributes {dimension_semantics = [#tpu.dimension_semantics<parallel>], iteration_bounds = array<i64: 1>, scalar_prefetch = 0 : i64, scratch_operands = 0 : i64, tpu.core_type = #tpu.core_type<tc>, window_params = [{pipeline_mode = #tpu.pipeline_mode<synchronous>, transform_indices = @transform_0, window_bounds = array<i64: 128, 128>}, {transform_indices = @transform_1, window_bounds = array<i64: 8, 128>}, {transform_indices = @transform_2, window_bounds = array<i64: 8, 128>}]} {
    %c0 = arith.constant 0 : index
    %c0_0 = arith.constant 0 : index
    %0 = vector.load %arg2[%c0, %c0_0] : memref<8x128xf32, #tpu.memory_space<vmem>>, vector<8x128xf32>
    %c0_1 = arith.constant 0 : index
    %c0_2 = arith.constant 0 : index
    %1 = vector.load %arg1[%c0_1, %c0_2] : memref<128x128xf32, #tpu.memory_space<vmem>>, vector<128x128xf32>
    %cst = arith.constant dense<0.000000e+00> : vector<8x128xf32>
    %2 = tpu.matmul %0, %1, %cst {dimension_numbers = #tpu.dot_dimension_numbers<[1], [0], [0], [1], [0, 0, 1, 1], [], []>} : vector<8x128xf32>, vector<128x128xf32>, vector<8x128xf32> -> vector<8x128xf32>
    %c0_3 = arith.constant 0 : index
    %c0_4 = arith.constant 0 : index
    %3 = vector.load %arg3[%c0_3, %c0_4] : memref<8x128xf32, #tpu.memory_space<vmem>>, vector<8x128xf32>
    tpu.vector_store %arg3[%c0_3, %c0_4], %2 {strides = array<i32>} : memref<8x128xf32, #tpu.memory_space<vmem>>, vector<8x128xf32>,
    return
  }
  func.func @transform_0(%arg0: i32) -> (i32, i32) {
    %c0_i32 = arith.constant 0 : i32
    %c0_i32_0 = arith.constant 0 : i32
    %c0_i32_1 = arith.constant 0 : i32
    return %c0_i32, %c0_i32_0 : i32, i32
  }
  func.func @transform_1(%arg0: i32) -> (i32, i32) {
    %c0_i32 = arith.constant 0 : i32
    %c0_i32_0 = arith.constant 0 : i32
    return %arg0, %c0_i32 : i32, i32
  }
  func.func @transform_2(%arg0: i32) -> (i32, i32) {
    %c0_i32 = arith.constant 0 : i32
    %c0_i32_0 = arith.constant 0 : i32
    return %arg0, %c0_i32 : i32, i32
  }
}

</mosaic_0001>

<bundles_post_ra>
// kernel: tpu_custom_call.1
= control target key start
LH: loop header
LB: loop body
LE: loop exit
PB: predicated region body
PF: predicated region fallthrough
CT: control target
= control target key end

     0   :  { %7 = vsyncpa [#allocation3], 0  ;;  %s357_s0 = inlined_call_operand.hbm [shape: f32[128,128], index: 0, kind: input, shape index: {}]   ;;  %s358_s1 = inlined_call_operand.hbm [shape: f32[8,128], index: 1, kind: input, shape index: {}]   ;;  %s359_s2 = inlined_call_operand.hbm [shape: f32[8,128], index: 2, kind: output, shape index: {}]  }
   0x1   :  { %8 = vsyncpa [#allocation6], 0 }
   0x2   :  { %9 = vsyncpa [#allocation4], 0  ;;  %s298_s9 = smov [#allocation2]   ;;  %s226_s13 = scalar_lea.hbm %s357_s0, 2048 }
   0x3   :  { %s15_s10 = sshll.u32 %s298_s9, 4  ;;  %p227_p0 = scmp.ne.s32.totalorder %s357_s0, %s226_s13  ;;  %s16_s10 = int_to_ptr.vmem [resolvable:$true] %s15_s10 }
   0x4   :  { %p230_p1 = scmp.lt.u32.totalorder %s226_s13, %s357_s0 }
   0x6   :  { %p232_p2 = pnand %p230_p1, %p227_p0 }
   0x8   :  { %235 = shalt.err (!%p232_p2)
}
   0x9   :  { %s236_s18 = scalar_lea.vmem %s16_s10, 2048  ;;  %p241_p4 = scmp.lt.s32.totalorder %s16_s10, %s16_s10 }
   0xa   :  { %p237_p3 = scmp.ne.s32.totalorder %s16_s10, %s236_s18  ;;  %p242_p5 = scmp.lt.s32.totalorder %s236_s18, %s236_s18 }
   0xc   :  { %p243_p6 = por %p242_p5, %p241_p4 }
   0xe   :  { %p244_p7 = pnand %p243_p6, %p237_p3 }
  0x10   :  { %247 = shalt.err (!%p244_p7)
}
  0x11   :  { %s299_s19 = smov 128   ;;  %s300_s20 = smov 8  }
  0x12   :  { %21 = dma.hbm_to_vmem [thread:$0]  %s357_s0, 2048, %s16_s10, [#allocation3], %s299_s19, %s299_s19, %s300_s20  }
  0x13   :  { %s301_s23 = smov [#allocation5]   ;;  %s248_s27 = scalar_lea.hbm %s358_s1, 128 }
  0x14   :  { %s28_s24 = sshll.u32 %s301_s23, 4  ;;  %p249_p8 = scmp.ne.s32.totalorder %s358_s1, %s248_s27  ;;  %s29_s24 = int_to_ptr.vmem [resolvable:$true] %s28_s24 }
  0x15   :  { %p252_p9 = scmp.lt.u32.totalorder %s248_s27, %s358_s1 }
  0x17   :  { %p254_p10 = pnand %p252_p9, %p249_p8 }
  0x19   :  { %257 = shalt.err (!%p254_p10)
}
  0x1a   :  { %s258_s4 = scalar_lea.vmem %s29_s24, 128  ;;  %p263_p12 = scmp.lt.s32.totalorder %s29_s24, %s29_s24 }
  0x1b   :  { %p259_p11 = scmp.ne.s32.totalorder %s29_s24, %s258_s4  ;;  %p264_p13 = scmp.lt.s32.totalorder %s258_s4, %s258_s4 }
  0x1d   :  { %p265_p0 = por %p264_p13, %p263_p12 }
  0x1f   :  { %p266_p1 = pnand %p265_p0, %p259_p11 }
  0x21   :  { %269 = shalt.err (!%p266_p1)
}
  0x22   :  { %31 = dma.hbm_to_vmem [thread:$0]  %s358_s1, 128, %s29_s24, [#allocation6]  }
  0x23   :  { %292 = dma.done.wait [#allocation3], 2048  }
  0x24   :  { %293 = vsyncadd [#allocation3], 4294965248 }
  0x25   :  { %294 = dma.done.wait [#allocation6], 128  }
  0x26   :  { %295 = vsyncadd [#allocation6], 4294967168  ;;  %v302_v0 = vmov 0.0|0.0   ;;  %vm303_vm0 = vmmov 0   ;;  %v304_v1 = vmov 0.0   ;;  %v39_v2 = vld [vmem:[#allocation2] sm:$0xff] }
  0x27   :  { %194 = vmatprep.subr.bf16.mxu0 %v302_v0  ;;  %191 = vmatprep.mubr.msk.f32.mxu0 %vm303_vm0, %v304_v1  ;;  %v40_v3 = vld [vmem:[#allocation2 + $0x8] sm:$0xff]  ;;  %v41_v4 = vld [vmem:[#allocation2 + $0x10] sm:$0xff]  ;;  %v42_v6 = vld [vmem:[#allocation2 + $0x18] sm:$0xff]  ;;  %s305_s1 = smov [#allocation7]  }
  0x28   :  { %v195_v5 = vpack.c.bf16 %v40_v3, %v39_v2  ;;  %v198_v7 = vpack.c.bf16 %v42_v6, %v41_v4  ;;  %v43_v8 = vld [vmem:[#allocation2 + $0x20] sm:$0xff]  ;;  %v44_v9 = vld [vmem:[#allocation2 + $0x28] sm:$0xff]  ;;  %v45_v11 = vld [vmem:[#allocation2 + $0x30] sm:$0xff]  ;;  %s132_s6 = sshll.u32 %s305_s1, 4  ;;  %s133_s6 = int_to_ptr.vmem [resolvable:$true] %s132_s6 }
  0x29   :  { %v201_v10 = vpack.c.bf16 %v44_v9, %v43_v8  ;;  %v46_v12 = vld [vmem:[#allocation2 + $0x38] sm:$0xff]  ;;  %v47_v14 = vld [vmem:[#allocation2 + $0x40] sm:$0xff]  ;;  %v48_v15 = vld [vmem:[#allocation2 + $0x48] sm:$0xff]  ;;  %s270_s7 = scalar_lea.vmem %s133_s6, 128  ;;  %p275_p3 = scmp.lt.s32.totalorder %s133_s6, %s133_s6 }
  0x2a   :  { %196 = vmatpush3.bf16.msra.mxu0 %v195_v5  ;;  %v204_v13 = vpack.c.bf16 %v46_v12, %v45_v11  ;;  %v207_v16 = vpack.c.bf16 %v48_v15, %v47_v14  ;;  %v49_v17 = vld [vmem:[#allocation2 + $0x50] sm:$0xff]  ;;  %v50_v18 = vld [vmem:[#allocation2 + $0x58] sm:$0xff]  ;;  %v51_v20 = vld [vmem:[#allocation2 + $0x60] sm:$0xff]  ;;  %p271_p2 = scmp.ne.s32.totalorder %s133_s6, %s270_s7  ;;  %p276_p4 = scmp.lt.s32.totalorder %s270_s7, %s270_s7 }
  0x2b   :  { %197 = vmatprep.subr.bf16.mxu0 %v302_v0  ;;  %v210_v19 = vpack.c.bf16 %v50_v18, %v49_v17  ;;  %v52_v21 = vld [vmem:[#allocation2 + $0x68] sm:$0xff]  ;;  %v53_v23 = vld [vmem:[#allocation2 + $0x70] sm:$0xff]  ;;  %v54_v24 = vld [vmem:[#allocation2 + $0x78] sm:$0xff] }
  0x2c   :  { %v213_v22 = vpack.c.bf16 %v52_v21, %v51_v20  ;;  %v216_v25 = vpack.c.bf16 %v54_v24, %v53_v23  ;;  %v38_v26 = vld [vmem:[#allocation5] sm:$0xff]  ;;  %p277_p5 = por %p276_p4, %p275_p3 }
  0x2e   :  { %199 = vmatpush3.bf16.msra.mxu0 %v198_v7  ;;  %p278_p6 = pnand %p277_p5, %p271_p2 }
  0x2f   :  { %200 = vmatprep.subr.bf16.mxu0 %v302_v0 }
  0x32   :  { %202 = vmatpush3.bf16.msra.mxu0 %v201_v10 }
  0x33   :  { %203 = vmatprep.subr.bf16.mxu0 %v302_v0 }
  0x36   :  { %205 = vmatpush3.bf16.msra.mxu0 %v204_v13 }
  0x37   :  { %206 = vmatprep.subr.bf16.mxu0 %v302_v0 }
  0x3a   :  { %208 = vmatpush3.bf16.msra.mxu0 %v207_v16 }
  0x3b   :  { %209 = vmatprep.subr.bf16.mxu0 %v302_v0 }
  0x3e   :  { %211 = vmatpush3.bf16.msra.mxu0 %v210_v19 }
  0x3f   :  { %212 = vmatprep.subr.bf16.mxu0 %v302_v0 }
  0x42   :  { %214 = vmatpush3.bf16.msra.mxu0 %v213_v22 }
  0x43   :  { %215 = vmatprep.subr.bf16.mxu0 %v302_v0 }
  0x46   :  { %217 = vmatpush3.bf16.msra.mxu0 %v216_v25 }
  0x49   :  { %192 = vmatmul.mubr.f32.vlgmr.msra.gmra.mrb[0].mxu0 %v38_v26 }
 0x11c   :  { %v121_v27 = vpop.f32.mrb[0].mxu0 }
 0x11d   :  { %125 = vst [vmem:[#allocation7] sm:$0xff] %v121_v27  ;;  %v193_v28 = vpop.f32.mrb[1].mxu0 }
 0x11e   :  { %281 = shalt.err (!%p278_p6)
}
 0x11f   :  { %s282_s10 = scalar_lea.hbm %s359_s2, 128 }
 0x120   :  { %p283_p7 = scmp.ne.s32.totalorder %s359_s2, %s282_s10  ;;  %p286_p8 = scmp.lt.u32.totalorder %s282_s10, %s359_s2 }
 0x122   :  { %p288_p9 = pnand %p286_p8, %p283_p7 }
 0x124   :  { %291 = shalt.err (!%p288_p9)
}
 0x125   :  { %135 = dma.vmem_to_hbm [thread:$0]  %s133_s6, 128, %s359_s2, [#allocation4]  }
 0x126   :  { %296 = dma.done.wait [#allocation4], 128  }
 0x127   :  { %297 = vsyncadd [#allocation4], 4294967168 }
 0x128   :  { %139 = vsyncpa [#allocation3], 1 }
 0x129   :  { %140 = vsyncpa [#allocation6], 1 }
 0x12a   :  { %141 = vsyncpa [#allocation4], 1 }

</bundles_post_ra>
